<compile_context>
chip_gen: v5e
topology: v5e:2x2
jax: 0.10.0
libtpu: 0.0.40
codegen_flags: <defaults>
</compile_context>

<pallas_src>
import math
import functools

import jax
import jax.numpy as jnp
from jax.experimental import pallas as pl
from jax.experimental.pallas import tpu as pltpu

LRELU_SLOPE = 0.2
LRELU_GAIN = math.sqrt(2.0)  # bias_act def_gain for 'lrelu'


def _cdiv(a, b):
    return -(-a // b)


def _round_up(n, m):
    return ((n + m - 1) // m) * m


def _pad2(x, shape):
    pads = [(0, t - s) for s, t in zip(x.shape, shape)]
    if any(p[1] for p in pads):
        return jnp.pad(x, pads)
    return x


def _choose_tile_b(B, max_tile=512):
    """Pick a batch tile that minimizes padding, keeps >=2 grid steps when
    B > 64 (so v7x's two TensorCores both get work) and caps the tile at
    max_tile rows to stay VMEM-friendly."""
    min_steps = 2 if B > 64 else 1
    n_steps = max(min_steps, _cdiv(B, max_tile))
    return _round_up(_cdiv(B, n_steps), 8)


# ----------------------------------------------------------------------------
# Kernel
# ----------------------------------------------------------------------------
def mapping_kernel(z_ref, w1_ref, b1_ref, w2_ref, b2_ref, *rest,
                   inv_latent, pixel_norm, psi):
    if psi != 1.0:
        wavg_ref, out_ref = rest
    else:
        (out_ref,) = rest

    mxu_dtype = w1_ref.dtype              # bf16 (default) or f32
    z = z_ref[...].astype(jnp.float32)    # (tile_b, Kp)

    if pixel_norm:
        # Sum over the (zero-padded) latent axis, normalize by the TRUE latent
        # dim; one per-row reciprocal instead of a full-tile divide.
        ms = jnp.sum(z * z, axis=1, keepdims=True) * inv_latent   # (tile_b, 1)
        denom = jnp.sqrt(ms) + 1e-8
        if mxu_dtype == jnp.bfloat16:
            inv = pl.reciprocal(denom, approx=True)   # EUP slot, ~free
        else:
            inv = 1.0 / denom                         # exact, reference parity
        z = z * inv

    # Layer 1: bf16 MXU matmul against the pre-scaled weight (f32 accumulate),
    # bias + lrelu on the VPU in f32.
    h = jnp.dot(z.astype(mxu_dtype), w1_ref[...],
                preferred_element_type=jnp.float32)
    h = h + b1_ref[...]
    h = jnp.where(h >= 0.0, h, LRELU_SLOPE * h) * LRELU_GAIN

    # Layer 2.
    y = jnp.dot(h.astype(mxu_dtype), w2_ref[...],
                preferred_element_type=jnp.float32)
    y = y + b2_ref[...]
    y = jnp.where(y >= 0.0, y, LRELU_SLOPE * y)

    # Final lrelu gain fused with the truncation lerp in the store epilogue:
    #   w_avg.lerp(w, psi) = (1-psi)*w_avg + psi*w,   w = gain * y
    if psi != 1.0:
        out = wavg_ref[...] * (1.0 - psi) + y * (psi * LRELU_GAIN)
    else:
        out = y * LRELU_GAIN
    out_ref[...] = out.astype(out_ref.dtype)


# ----------------------------------------------------------------------------
# Wrapper
# ----------------------------------------------------------------------------
def prepare_mapping_params(params, *, use_bf16=True):
    """Scale / transpose / pad / cast the Mapping weights ONCE.

    In inference loops call this once and pass the result to mapping_forward:
    the per-call path then contains no weight transpose/scale traffic.
    """
    w1 = jnp.asarray(params["w1"], jnp.float32)   # (style, latent) torch layout
    w2 = jnp.asarray(params["w2"], jnp.float32)   # (style, style)
    style_dim, latent_dim = w1.shape
    mxu_dtype = jnp.bfloat16 if use_bf16 else jnp.float32

    Kp = _round_up(latent_dim, 128)
    Np = _round_up(style_dim, 128)

    w1s = (w1.T * (1.0 / math.sqrt(latent_dim))).astype(mxu_dtype)  # (lat, sty)
    w2s = (w2.T * (1.0 / math.sqrt(style_dim))).astype(mxu_dtype)   # (sty, sty)

    def _row(v):
        return jnp.asarray(v, jnp.float32).reshape(1, style_dim)

    return {
        "_prepared": True,
        "latent_dim": latent_dim,
        "style_dim": style_dim,
        "Kp": Kp,
        "Np": Np,
        "w1p": _pad2(w1s, (Kp, Np)),
        "w2p": _pad2(w2s, (Np, Np)),
        "b1p": _pad2(_row(params["b1"]), (1, Np)),
        "b2p": _pad2(_row(params["b2"]), (1, Np)),
        "wavgp": _pad2(_row(params["w_avg"]), (1, Np)),
    }


def mapping_forward(z, params, *, pixel_norm=True, truncation_psi=1.0,
                    use_bf16=True, out_dtype=jnp.float32):
    """Eval-mode forward of the Mapping network.

    z: (B, latent_dim) float32
    params: either the raw PyTorch-layout dict {w1, b1, w2, b2, w_avg} or the
            output of prepare_mapping_params().
    """
    z = jnp.asarray(z, jnp.float32)
    B, latent_dim = z.shape

    prep = params if params.get("_prepared", False) else prepare_mapping_params(
        params, use_bf16=use_bf16)
    assert latent_dim == prep["latent_dim"], "latent dim mismatch"
    style_dim, Kp, Np = prep["style_dim"], prep["Kp"], prep["Np"]

    tile_b = _choose_tile_b(B)
    Bp = _round_up(B, tile_b)
    grid = (Bp // tile_b,)

    zp = _pad2(z, (Bp, Kp))

    psi = float(truncation_psi)
    kernel = functools.partial(
        mapping_kernel,
        inv_latent=1.0 / float(latent_dim),
        pixel_norm=bool(pixel_norm),
        psi=psi,
    )

    def const_spec(shape):
        return pl.BlockSpec(shape, lambda i: (0, 0))   # VMEM-resident block

    in_specs = [
        pl.BlockSpec((tile_b, Kp), lambda i: (i, 0)),   # z tile (pipelined)
        const_spec((Kp, Np)),                           # W1
        const_spec((1, Np)),                            # b1
        const_spec((Np, Np)),                           # W2
        const_spec((1, Np)),                            # b2
    ]
    args = [zp, prep["w1p"], prep["b1p"], prep["w2p"], prep["b2p"]]
    if psi != 1.0:
        in_specs.append(const_spec((1, Np)))            # w_avg only when used
        args.append(prep["wavgp"])

    # VMEM budget (double-buffered blocks + intermediates), with 2x headroom,
    # clamped to [32 MiB, 48 MiB] so it is valid on v5e/v6e/v7x.
    w_bytes = jnp.dtype(prep["w1p"].dtype).itemsize
    out_bytes = jnp.dtype(out_dtype).itemsize
    vmem_est = (2 * tile_b * Kp * 4                     # z tiles (f32)
                + 2 * tile_b * Np * out_bytes           # out tiles
                + 2 * (Kp * Np + Np * Np) * w_bytes     # weights
                + 2 * 3 * Np * 4                        # biases / w_avg
                + 2 * tile_b * Np * 4)                  # h / y intermediates
    vmem_limit = int(min(48 << 20, max(32 << 20, 2 * vmem_est)))

    flops = 2 * Bp * (Kp + Np) * Np + 8 * Bp * Np
    bytes_accessed = (4 * Bp * Kp + w_bytes * (Kp + Np) * Np + 4 * 3 * Np
                      + out_bytes * Bp * Np)

    out = pl.pallas_call(
        kernel,
        out_shape=jax.ShapeDtypeStruct((Bp, Np), out_dtype),
        grid=grid,
        in_specs=in_specs,
        out_specs=pl.BlockSpec((tile_b, Np), lambda i: (i, 0)),
        compiler_params=pltpu.CompilerParams(
            dimension_semantics=("parallel",),
            vmem_limit_bytes=vmem_limit),
        cost_estimate=pl.CostEstimate(
            flops=flops,
            transcendentals=Bp if pixel_norm else 0,
            bytes_accessed=bytes_accessed),
    )(*args)

    return out[:B, :style_dim]


# ----------------------------------------------------------------------------
# Pure-JAX reference (mirrors the PyTorch module, eval mode)
# ----------------------------------------------------------------------------
def _reference_forward(z, params, pixel_norm=True, truncation_psi=1.0):
    z = jnp.asarray(z, jnp.float32)
    if pixel_norm:
        z = z / (jnp.sqrt(jnp.mean(z * z, axis=1, keepdims=True)) + 1e-8)
    h = z @ (params["w1"] * (1.0 / math.sqrt(z.shape[1]))).T + params["b1"]
    h = jnp.where(h >= 0, h, LRELU_SLOPE * h) * LRELU_GAIN
    h = h @ (params["w2"] * (1.0 / math.sqrt(h.shape[1]))).T + params["b2"]
    h = jnp.where(h >= 0, h, LRELU_SLOPE * h) * LRELU_GAIN
    if truncation_psi != 1.0:
        w_avg = params["w_avg"].reshape(1, -1)
        h = w_avg + truncation_psi * (h - w_avg)
    return h


if __name__ == "__main__":
    # Small shapes consistent with the module (B not a multiple of 8 to
    # exercise batch padding; latent=64 exercises K padding to 128).
    B, latent_dim, style_dim = 6, 64, 128

    key = jax.random.PRNGKey(0)
    kz, kw1, kw2, kb1, kb2, ka, kz2 = jax.random.split(key, 7)

    z = jax.random.normal(kz, (B, latent_dim), dtype=jnp.float32)

    params = {
        "w1": jax.random.normal(kw1, (style_dim, latent_dim), dtype=jnp.float32),
        "b1": 0.1 * jax.random.normal(kb1, (style_dim,), dtype=jnp.float32),
        "w2": jax.random.normal(kw2, (style_dim, style_dim), dtype=jnp.float32),
        "b2": 0.1 * jax.random.normal(kb2, (style_dim,), dtype=jnp.float32),
        "w_avg": 0.1 * jax.random.normal(ka, (style_dim,), dtype=jnp.float32),
    }

    # Prepare weights once (bf16 MXU path and exact f32 fallback).
    prep_bf16 = prepare_mapping_params(params, use_bf16=True)
    prep_f32 = prepare_mapping_params(params, use_bf16=False)

    ref1 = _reference_forward(z, params, pixel_norm=True, truncation_psi=1.0)
    ref7 = _reference_forward(z, params, pixel_norm=True, truncation_psi=0.7)

    # --- exact f32 path: tight tolerance ---
    w_f32 = jax.block_until_ready(
        mapping_forward(z, prep_f32, pixel_norm=True, truncation_psi=1.0))
    assert w_f32.shape == (B, style_dim)
    assert jnp.allclose(w_f32, ref1, atol=1e-4, rtol=1e-4), "f32 psi=1 mismatch"

    w_f32_t = jax.block_until_ready(
        mapping_forward(z, prep_f32, pixel_norm=True, truncation_psi=0.7))
    assert jnp.allclose(w_f32_t, ref7, atol=1e-4, rtol=1e-4), "f32 psi=0.7 mismatch"

    # --- default bf16 MXU path: relaxed tolerance (f32 accumulate) ---
    w_bf = jax.block_until_ready(
        mapping_forward(z, prep_bf16, pixel_norm=True, truncation_psi=1.0))
    assert jnp.allclose(w_bf, ref1, atol=3e-2, rtol=3e-2), "bf16 psi=1 mismatch"

    w_bf_t = jax.block_until_ready(
        mapping_forward(z, prep_bf16, pixel_norm=True, truncation_psi=0.7))
    assert jnp.allclose(w_bf_t, ref7, atol=3e-2, rtol=3e-2), "bf16 psi=0.7 mismatch"

    # --- multi-step grid path (B > 64 -> >= 2 grid steps, batch padding) ---
    B2 = 200
    z2 = jax.random.normal(kz2, (B2, latent_dim), dtype=jnp.float32)
    ref2 = _reference_forward(z2, params, pixel_norm=True, truncation_psi=0.7)
    w2_bf = jax.block_until_ready(
        mapping_forward(z2, prep_bf16, pixel_norm=True, truncation_psi=0.7))
    assert w2_bf.shape == (B2, style_dim)
    assert jnp.allclose(w2_bf, ref2, atol=3e-2, rtol=3e-2), "bf16 grid mismatch"

    print("KERNEL_OK")
</pallas_src>

<mosaic_0001>
module attributes {stable_mosaic.version = 11 : i64} {
  func.func @mapping_kernel(%arg0: i32, %arg1: memref<8x128xf32, #tpu.memory_space<vmem>>, %arg2: memref<128x128xf32, #tpu.memory_space<vmem>>, %arg3: memref<1x128xf32, #tpu.memory_space<vmem>>, %arg4: memref<128x128xf32, #tpu.memory_space<vmem>>, %arg5: memref<1x128xf32, #tpu.memory_space<vmem>>, %arg6: memref<8x128xf32, #tpu.memory_space<vmem>>) attributes {dimension_semantics = [#tpu.dimension_semantics<parallel>], iteration_bounds = array<i64: 1>, scalar_prefetch = 0 : i64, scratch_operands = 0 : i64, tpu.core_type = #tpu.core_type<tc>, window_params = [{transform_indices = @transform_0, window_bounds = array<i64: 8, 128>}, {pipeline_mode = #tpu.pipeline_mode<synchronous>, transform_indices = @transform_1, window_bounds = array<i64: 128, 128>}, {pipeline_mode = #tpu.pipeline_mode<synchronous>, transform_indices = @transform_2, window_bounds = array<i64: 1, 128>}, {pipeline_mode = #tpu.pipeline_mode<synchronous>, transform_indices = @transform_3, window_bounds = array<i64: 128, 128>}, {pipeline_mode = #tpu.pipeline_mode<synchronous>, transform_indices = @transform_4, window_bounds = array<i64: 1, 128>}, {transform_indices = @transform_5, window_bounds = array<i64: 8, 128>}]} {
    %c0 = arith.constant 0 : index
    %c0_0 = arith.constant 0 : index
    %0 = vector.load %arg1[%c0, %c0_0] : memref<8x128xf32, #tpu.memory_space<vmem>>, vector<8x128xf32>
    %1 = arith.mulf %0, %0 : vector<8x128xf32>
    %cst = arith.constant dense<0.000000e+00> : vector<8xf32>
    %2 = vector.multi_reduction <add>, %1, %cst [1] : vector<8x128xf32> to vector<8xf32>
    %3 = vector.shape_cast %2 : vector<8xf32> to vector<8x1xf32>
    %cst_1 = arith.constant 1.562500e-02 : f32
    %4 = vector.broadcast %cst_1 : f32 to vector<8x1xf32>
    %5 = arith.mulf %3, %4 : vector<8x1xf32>
    %6 = math.sqrt %5 : vector<8x1xf32>
    %cst_2 = arith.constant 9.99999993E-9 : f32
    %7 = vector.broadcast %cst_2 : f32 to vector<8x1xf32>
    %8 = arith.addf %6, %7 : vector<8x1xf32>
    %cst_3 = arith.constant 1.000000e+00 : f32
    %9 = vector.broadcast %cst_3 : f32 to vector<8x1xf32>
    %10 = arith.divf %9, %8 : vector<8x1xf32>
    %11 = vector.broadcast %10 : vector<8x1xf32> to vector<8x128xf32>
    %12 = arith.mulf %0, %11 : vector<8x128xf32>
    %c0_4 = arith.constant 0 : index
    %c0_5 = arith.constant 0 : index
    %13 = vector.load %arg2[%c0_4, %c0_5] : memref<128x128xf32, #tpu.memory_space<vmem>>, vector<128x128xf32>
    %cst_6 = arith.constant dense<0.000000e+00> : vector<8x128xf32>
    %14 = tpu.matmul %12, %13, %cst_6 {dimension_numbers = #tpu.dot_dimension_numbers<[1], [0], [0], [1], [0, 0, 1, 1], [], []>} : vector<8x128xf32>, vector<128x128xf32>, vector<8x128xf32> -> vector<8x128xf32>
    %c0_7 = arith.constant 0 : index
    %c0_8 = arith.constant 0 : index
    %15 = vector.load %arg3[%c0_7, %c0_8] : memref<1x128xf32, #tpu.memory_space<vmem>>, vector<1x128xf32>
    %16 = vector.broadcast %15 : vector<1x128xf32> to vector<8x128xf32>
    %17 = arith.addf %14, %16 : vector<8x128xf32>
    %cst_9 = arith.constant 0.000000e+00 : f32
    %18 = vector.broadcast %cst_9 : f32 to vector<8x128xf32>
    %19 = arith.cmpf oge, %17, %18 : vector<8x128xf32>
    %cst_10 = arith.constant 2.000000e-01 : f32
    %20 = vector.broadcast %cst_10 : f32 to vector<8x128xf32>
    %21 = arith.mulf %20, %17 : vector<8x128xf32>
    %22 = arith.select %19, %17, %21 : vector<8x128xi1>, vector<8x128xf32>
    %cst_11 = arith.constant 1.41421354 : f32
    %23 = vector.broadcast %cst_11 : f32 to vector<8x128xf32>
    %24 = arith.mulf %22, %23 : vector<8x128xf32>
    %c0_12 = arith.constant 0 : index
    %c0_13 = arith.constant 0 : index
    %25 = vector.load %arg4[%c0_12, %c0_13] : memref<128x128xf32, #tpu.memory_space<vmem>>, vector<128x128xf32>
    %cst_14 = arith.constant dense<0.000000e+00> : vector<8x128xf32>
    %26 = tpu.matmul %24, %25, %cst_14 {dimension_numbers = #tpu.dot_dimension_numbers<[1], [0], [0], [1], [0, 0, 1, 1], [], []>} : vector<8x128xf32>, vector<128x128xf32>, vector<8x128xf32> -> vector<8x128xf32>
    %c0_15 = arith.constant 0 : index
    %c0_16 = arith.constant 0 : index
    %27 = vector.load %arg5[%c0_15, %c0_16] : memref<1x128xf32, #tpu.memory_space<vmem>>, vector<1x128xf32>
    %28 = vector.broadcast %27 : vector<1x128xf32> to vector<8x128xf32>
    %29 = arith.addf %26, %28 : vector<8x128xf32>
    %cst_17 = arith.constant 0.000000e+00 : f32
    %30 = vector.broadcast %cst_17 : f32 to vector<8x128xf32>
    %31 = arith.cmpf oge, %29, %30 : vector<8x128xf32>
    %cst_18 = arith.constant 2.000000e-01 : f32
    %32 = vector.broadcast %cst_18 : f32 to vector<8x128xf32>
    %33 = arith.mulf %32, %29 : vector<8x128xf32>
    %34 = arith.select %31, %29, %33 : vector<8x128xi1>, vector<8x128xf32>
    %cst_19 = arith.constant 1.41421354 : f32
    %35 = vector.broadcast %cst_19 : f32 to vector<8x128xf32>
    %36 = arith.mulf %34, %35 : vector<8x128xf32>
    %c0_20 = arith.constant 0 : index
    %c0_21 = arith.constant 0 : index
    %37 = vector.load %arg6[%c0_20, %c0_21] : memref<8x128xf32, #tpu.memory_space<vmem>>, vector<8x128xf32>
    tpu.vector_store %arg6[%c0_20, %c0_21], %36 {strides = array<i32>} : memref<8x128xf32, #tpu.memory_space<vmem>>, vector<8x128xf32>,
    return
  }
  func.func @transform_0(%arg0: i32) -> (i32, i32) {
    %c0_i32 = arith.constant 0 : i32
    %c0_i32_0 = arith.constant 0 : i32
    return %arg0, %c0_i32 : i32, i32
  }
  func.func @transform_1(%arg0: i32) -> (i32, i32) {
    %c0_i32 = arith.constant 0 : i32
    %c0_i32_0 = arith.constant 0 : i32
    %c0_i32_1 = arith.constant 0 : i32
    return %c0_i32, %c0_i32_0 : i32, i32
  }
  func.func @transform_2(%arg0: i32) -> (i32, i32) {
    %c0_i32 = arith.constant 0 : i32
    %c0_i32_0 = arith.constant 0 : i32
    %c0_i32_1 = arith.constant 0 : i32
    return %c0_i32, %c0_i32_0 : i32, i32
  }
  func.func @transform_3(%arg0: i32) -> (i32, i32) {
    %c0_i32 = arith.constant 0 : i32
    %c0_i32_0 = arith.constant 0 : i32
    %c0_i32_1 = arith.constant 0 : i32
    return %c0_i32, %c0_i32_0 : i32, i32
  }
  func.func @transform_4(%arg0: i32) -> (i32, i32) {
    %c0_i32 = arith.constant 0 : i32
    %c0_i32_0 = arith.constant 0 : i32
    %c0_i32_1 = arith.constant 0 : i32
    return %c0_i32, %c0_i32_0 : i32, i32
  }
  func.func @transform_5(%arg0: i32) -> (i32, i32) {
    %c0_i32 = arith.constant 0 : i32
    %c0_i32_0 = arith.constant 0 : i32
    return %arg0, %c0_i32 : i32, i32
  }
}

</mosaic_0001>

<bundles_post_ra>
// kernel: tpu_custom_call.1
= control target key start
LH: loop header
LB: loop body
LE: loop exit
PB: predicated region body
PF: predicated region fallthrough
CT: control target
= control target key end

     0   :  { %10 = vsyncpa [#allocation3], 0  ;;  %s380_s0 = inlined_call_operand.hbm [shape: f32[8,128], index: 0, kind: input, shape index: {}]   ;;  %s381_s1 = inlined_call_operand.hbm [shape: f32[128,128], index: 1, kind: input, shape index: {}]   ;;  %s382_s2 = inlined_call_operand.vmem [shape: f32[1,128], index: 2, kind: input, shape index: {}]   ;;  %s383_s3 = inlined_call_operand.hbm [shape: f32[128,128], index: 3, kind: input, shape index: {}]   ;;  %s384_s4 = inlined_call_operand.vmem [shape: f32[1,128], index: 4, kind: input, shape index: {}]   ;;  %s385_s5 = inlined_call_operand.hbm [shape: f32[8,128], index: 5, kind: output, shape index: {}]  }
   0x1   :  { %11 = vsyncpa [#allocation6], 0  ;;  %s28_s20 = sshll.u32 %s381_s1, 4  ;;  %s29_s20 = int_to_ptr.hbm [resolvable:$true] %s28_s20 }
   0x2   :  { %12 = vsyncpa [#allocation4], 0  ;;  %s321_s21 = smov [#allocation5]   ;;  %s18_s25 = sshll.u32 %s380_s0, 4  ;;  %s19_s25 = int_to_ptr.hbm [resolvable:$true] %s18_s25 }
   0x3   :  { %s30_s22 = sshll.u32 %s321_s21, 4  ;;  %s322_s26 = smov 128   ;;  %s31_s22 = int_to_ptr.vmem [resolvable:$true] %s30_s22 }
   0x4   :  { %s323_s27 = smov 8   ;;  %s324_s28 = smov [#allocation2]  }
   0x5   :  { %36 = dma.hbm_to_vmem [thread:$0]  %s29_s20, 2048, %s31_s22, [#allocation6], %s322_s26, %s322_s26, %s323_s27  }
   0x6   :  { %s20_s29 = sshll.u32 %s324_s28, 4  ;;  %s43_s7 = sshll.u32 %s383_s3, 4  ;;  %s21_s29 = int_to_ptr.vmem [resolvable:$true] %s20_s29  ;;  %s44_s7 = int_to_ptr.hbm [resolvable:$true] %s43_s7 }
   0x7   :  { %23 = dma.hbm_to_vmem [thread:$0]  %s19_s25, 128, %s21_s29, [#allocation3]  }
   0x8   :  { %s325_s1 = smov [#allocation7]  }
   0x9   :  { %s45_s8 = sshll.u32 %s325_s1, 4  ;;  %s46_s8 = int_to_ptr.vmem [resolvable:$true] %s45_s8 }
   0xa   :  { %51 = dma.hbm_to_vmem [thread:$0]  %s44_s7, 2048, %s46_s8, [#allocation6], %s322_s26, %s322_s26, %s323_s27  }
   0xb   :  { %315 = dma.done.wait [#allocation3], 128  }
   0xc   :  { %316 = vsyncadd [#allocation3], 4294967168 }
   0xd   :  { %317 = dma.done.wait [#allocation6], 4096  }
   0xe   :  { %318 = vsyncadd [#allocation6], 4294963200  ;;  %v366_v0 = vld [vmem:[#allocation2] sm:$0xff]  ;;  %v114_v3 = vld [vmem:[#allocation5 + $0x70] sm:$0xff]  ;;  %s326_s11 = smov [#allocation8]  }
   0xf   :  { %v67_v1 = vmul.f32 %v366_v0, %v366_v0  ;;  %v115_v2 = vld [vmem:[#allocation5 + $0x78] sm:$0xff]  ;;  %v113_v4 = vld [vmem:[#allocation5 + $0x68] sm:$0xff]  ;;  %v112_v5 = vld [vmem:[#allocation5 + $0x60] sm:$0xff]  ;;  %s194_s12 = sshll.u32 %s326_s11, 4  ;;  %s195_s12 = int_to_ptr.vmem [resolvable:$true] %s194_s12 }
  0x10   :  { %120 = vmatpush.msra.mxu0 %v115_v2  ;;  %v111_v6 = vld [vmem:[#allocation5 + $0x58] sm:$0xff]  ;;  %v110_v7 = vld [vmem:[#allocation5 + $0x50] sm:$0xff]  ;;  %v109_v8 = vld [vmem:[#allocation5 + $0x48] sm:$0xff] }
  0x11   :  { %68 = vadd.xlane.f32.xlu0 %v67_v1  ;;  %v108_v9 = vld [vmem:[#allocation5 + $0x40] sm:$0xff]  ;;  %v107_v10 = vld [vmem:[#allocation5 + $0x38] sm:$0xff]  ;;  %v106_v11 = vld [vmem:[#allocation5 + $0x30] sm:$0xff] }
  0x12   :  { %121 = vmatpush.msra.mxu0 %v114_v3  ;;  %v105_v12 = vld [vmem:[#allocation5 + $0x28] sm:$0xff]  ;;  %v104_v15 = vld [vmem:[#allocation5 + $0x20] sm:$0xff]  ;;  %v103_v16 = vld [vmem:[#allocation5 + $0x18] sm:$0xff] }
  0x13   :  { %v102_v17 = vld [vmem:[#allocation5 + $0x10] sm:$0xff]  ;;  %v101_v18 = vld [vmem:[#allocation5 + $0x8] sm:$0xff]  ;;  %v100_v20 = vld [vmem:[#allocation5] sm:$0xff] }
  0x14   :  { %122 = vmatpush.msra.mxu0 %v113_v4  ;;  %v159_v23 = vld [vmem:[#allocation7 + $0x78] sm:$0xff]  ;;  %v158_v24 = vld [vmem:[#allocation7 + $0x70] sm:$0xff]  ;;  %v157_v26 = vld [vmem:[#allocation7 + $0x68] sm:$0xff] }
  0x15   :  { %164 = vmatpush.msra.mxu1 %v159_v23  ;;  %v156_v28 = vld [vmem:[#allocation7 + $0x60] sm:$0xff]  ;;  %v155_v30 = vld [vmem:[#allocation7 + $0x58] sm:$0xff]  ;;  %v154_v33 = vld [vmem:[#allocation7 + $0x50] sm:$0xff] }
  0x16   :  { %123 = vmatpush.msra.mxu0 %v112_v5  ;;  %v153_v36 = vld [vmem:[#allocation7 + $0x48] sm:$0xff]  ;;  %v152_v38 = vld [vmem:[#allocation7 + $0x40] sm:$0xff]  ;;  %v151_v39 = vld [vmem:[#allocation7 + $0x38] sm:$0xff] }
  0x17   :  { %165 = vmatpush.msra.mxu1 %v158_v24  ;;  %v150_v40 = vld [vmem:[#allocation7 + $0x30] sm:$0xff]  ;;  %v149_v41 = vld [vmem:[#allocation7 + $0x28] sm:$0xff]  ;;  %v148_v44 = vld [vmem:[#allocation7 + $0x20] sm:$0xff] }
  0x18   :  { %124 = vmatpush.msra.mxu0 %v111_v6  ;;  %v147_v54 = vld [vmem:[#allocation7 + $0x18] sm:$0xff]  ;;  %v146_v55 = vld [vmem:[#allocation7 + $0x10] sm:$0xff]  ;;  %v145_v56 = vld [vmem:[#allocation7 + $0x8] sm:$0xff] }
  0x19   :  { %166 = vmatpush.msra.mxu1 %v157_v26  ;;  %v144_v57 = vld [vmem:[#allocation7] sm:$0xff]  ;;  %v213_v58 = vld [vmem:[%s382_s2] ss:$0 sm:$0xff]  ;;  %s196_s2 = sshll.u32 %s385_s5, 4  ;;  %s197_s2 = int_to_ptr.hbm [resolvable:$true] %s196_s2 }
  0x1a   :  { %125 = vmatpush.msra.mxu0 %v110_v7 }
  0x1b   :  { %167 = vmatpush.msra.mxu1 %v156_v28 }
  0x1c   :  { %126 = vmatpush.msra.mxu0 %v109_v8 }
  0x1d   :  { %168 = vmatpush.msra.mxu1 %v155_v30 }
  0x1e   :  { %127 = vmatpush.msra.mxu0 %v108_v9 }
  0x1f   :  { %169 = vmatpush.msra.mxu1 %v154_v33 }
  0x20   :  { %128 = vmatpush.msra.mxu0 %v107_v10 }
  0x21   :  { %170 = vmatpush.msra.mxu1 %v153_v36 }
  0x22   :  { %129 = vmatpush.msra.mxu0 %v106_v11 }
  0x23   :  { %171 = vmatpush.msra.mxu1 %v152_v38 }
  0x24   :  { %130 = vmatpush.msra.mxu0 %v105_v12 }
  0x25   :  { %172 = vmatpush.msra.mxu1 %v151_v39 }
  0x26   :  { %131 = vmatpush.msra.mxu0 %v104_v15 }
  0x27   :  { %173 = vmatpush.msra.mxu1 %v150_v40 }
  0x28   :  { %132 = vmatpush.msra.mxu0 %v103_v16 }
  0x29   :  { %174 = vmatpush.msra.mxu1 %v149_v41 }
  0x2a   :  { %133 = vmatpush.msra.mxu0 %v102_v17 }
  0x2b   :  { %175 = vmatpush.msra.mxu1 %v148_v44 }
  0x2c   :  { %134 = vmatpush.msra.mxu0 %v101_v18 }
  0x2d   :  { %176 = vmatpush.msra.mxu1 %v147_v54 }
  0x2e   :  { %135 = vmatpush.msra.mxu0 %v100_v20 }
  0x2f   :  { %177 = vmatpush.msra.mxu1 %v146_v55 }
  0x31   :  { %178 = vmatpush.msra.mxu1 %v145_v56 }
  0x33   :  { %179 = vmatpush.msra.mxu1 %v144_v57 }
  0x84   :  { %v69_v13 = vpop.xlane.xlu0 %68 }
  0x85   :  { %v70_v14 = vmul.f32 0.015625, %v69_v13 }
  0x87   :  { %215 = vrsqrt.f32 %v70_v14  ;;  %vm78_vm0 = vcmp.eq.f32.partialorder %v70_v14, inf  ;;  %v81_v32 = vand.u32 2147483648, %v70_v14  ;;  %vm80_vm1 = vcmp.eq.f32.partialorder %v70_v14, 0.0 }
  0x8d   :  { %v216_v19 = vpop.eup %215 }
  0x8e   :  { %v72_v21 = vmul.f32 %v216_v19, %v70_v14 }
  0x90   :  { %v73_v22 = vmul.f32 %v216_v19, %v72_v21 }
  0x92   :  { %v74_v25 = vmul.f32 0.5, %v73_v22 }
  0x94   :  { %v75_v27 = vsub.f32 1.5, %v74_v25 }
  0x96   :  { %v76_v29 = vmul.f32 %v216_v19, %v75_v27 }
  0x98   :  { %v77_v31 = vmul.f32 %v76_v29, %v70_v14 }
  0x9a   :  { %v79_v34 = vsel %vm78_vm0, %v70_v14, %v77_v31 }
  0x9b   :  { %v82_v35 = vsel %vm80_vm1, %v81_v32, %v79_v34 }
  0x9c   :  { %v83_v37 = vadd.f32 1e-08, %v82_v35 }
  0x9e   :  { %217 = vrcp.f32 %v83_v37  ;;  %v95_v46 = vand.u32 2147483648, %v83_v37  ;;  %v93_v48 = vand.u32 2147483647, %v83_v37  ;;  %vm89_vm3 = vweird.f32 %v83_v37 }
  0xa0   :  { %v96_v50 = vor.u32 1.1754944e-38, %v95_v46  ;;  %vm94_vm5 = vcmp.eq.f32.partialorder %v93_v48, 8.507059e+37 }
  0xa4   :  { %v218_v42 = vpop.eup %217 }
  0xa5   :  { %v85_v43 = vmul.f32 %v218_v42, %v83_v37  ;;  %vm90_vm2 = vweird.f32 %v218_v42 }
  0xa6   :  { %vm91_vm4 = vmor %vm89_vm3, %vm90_vm2 }
  0xa7   :  { %v86_v45 = vsub.f32 1.0, %v85_v43 }
  0xa9   :  { %v87_v47 = vmul.f32 %v218_v42, %v86_v45 }
  0xab   :  { %v88_v49 = vadd.f32 %v218_v42, %v87_v47 }
  0xad   :  { %v92_v51 = vsel %vm91_vm4, %v218_v42, %v88_v49 }
  0xae   :  { %v97_v52 = vsel %vm94_vm5, %v96_v50, %v92_v51 }
  0xaf   :  { %v99_v53 = vmul.f32 %v97_v52, %v366_v0  ;;  %v214_v0 = vld [vmem:[%s384_s4] ss:$0 sm:$0xff] }
  0xb1   :  { %136 = vmatmul.f32.vlgmr.msra.gmra.mxu0 %v99_v53 }
 0x12e   :  { %v137_v59 = vpop.f32.mrf.mxu0 }
 0x12f   :  { %v138_v60 = vadd.f32 %v213_v58, %v137_v59 }
 0x131   :  { %v141_v61 = vmul.f32 0.2, %v138_v60  ;;  %vm140_vm6 = vcmp.ge.f32.partialorder %v138_v60, 0.0 }
 0x133   :  { %v142_v62 = vsel %vm140_vm6, %v138_v60, %v141_v61 }
 0x134   :  { %v143_v63 = vmul.f32 1.4142135, %v142_v62 }
 0x136   :  { %180 = vmatmul.f32.vlgmr.msra.gmra.mxu1 %v143_v63 }
 0x1b3   :  { %v181_v1 = vpop.f32.mrf.mxu1 }
 0x1b4   :  { %v182_v2 = vadd.f32 %v214_v0, %v181_v1 }
 0x1b6   :  { %vm184_vm7 = vcmp.ge.f32.partialorder %v182_v2, 0.0  ;;  %v185_v3 = vmul.f32 0.2, %v182_v2 }
 0x1b8   :  { %v186_v4 = vsel %vm184_vm7, %v182_v2, %v185_v3 }
 0x1b9   :  { %v187_v5 = vmul.f32 1.4142135, %v186_v4 }
 0x1bb   :  { %188 = vst [vmem:[#allocation8] sm:$0xff] %v187_v5 }
 0x1bc   :  { %199 = dma.vmem_to_hbm [thread:$0]  %s195_s12, 128, %s197_s2, [#allocation4]  }
 0x1bd   :  { %319 = dma.done.wait [#allocation4], 128  }
 0x1be   :  { %320 = vsyncadd [#allocation4], 4294967168 }
 0x1bf   :  { %204 = vsyncpa [#allocation3], 1 }
 0x1c0   :  { %205 = vsyncpa [#allocation6], 1 }
 0x1c1   :  { %206 = vsyncpa [#allocation4], 1 }

</bundles_post_ra>
